<compile_context>
chip_gen: v5e
topology: v5e:2x2
jax: 0.10.0
libtpu: 0.0.40
codegen_flags: <defaults>
</compile_context>

<pallas_src>
import jax
import jax.numpy as jnp
from jax.experimental import pallas as pl
from jax.experimental.pallas import tpu as pltpu


def _normalize_kernel(x_ref, scale_ref, bias_ref, o_ref):
    # Single fused affine: (x - mean) / std  ==  x * (1/std) + (-mean/std)
    # scale_ref / bias_ref are (block_rows, 1) -> broadcast over the lane dim.
    o_ref[...] = x_ref[...] * scale_ref[...] + bias_ref[...]


def _pick_block_rows(rows, cols, dtype_bytes=4, max_tile_bytes=4 * 1024 * 1024):
    """Largest row-tile that (a) divides `rows`, (b) is a multiple of 8 (or the
    full extent), and (c) keeps one f32 tile <= ~4 MiB so double-buffered
    in+out tiles fit comfortably inside v7x's 64 MiB VMEM (and trivially in
    v5e/v6e's 128 MiB)."""
    budget_rows = max(8, max_tile_bytes // max(1, cols * dtype_bytes))
    if rows <= budget_rows:
        return rows
    br = (budget_rows // 8) * 8
    while br >= 8:
        if rows % br == 0:
            return br
        br -= 8
    return rows  # fallback: single block (tiny/odd shapes)


def normalize(x, mean, std):
    """Normalize forward.

    x    : (N, C, *spatial) float32
    mean : (C,) float32
    std  : (C,) float32 (all non-zero)
    """
    N, C = x.shape[0], x.shape[1]
    spatial = 1
    for d in x.shape[2:]:
        spatial *= int(d)
    rows, cols = N * C, spatial

    # Fold the two ops into one affine on the tiny (C,) vectors (wrapper-side,
    # O(C) work — not a per-element pre-scale of the input).
    inv_std = (1.0 / std).astype(x.dtype)
    scale_c = inv_std                          # (C,)
    bias_c = (-mean.astype(x.dtype)) * inv_std  # (C,)

    # Per-row (row = one (n, c) pair) scale/bias columns.
    scale_rows = jnp.tile(scale_c, N).reshape(rows, 1)
    bias_rows = jnp.tile(bias_c, N).reshape(rows, 1)

    # Lane-dense 2D slab: last dim H*W maps onto full 128-lane groups.
    x2 = x.reshape(rows, cols)

    block_rows = _pick_block_rows(rows, cols)
    grid = (rows // block_rows,)

    out = pl.pallas_call(
        _normalize_kernel,
        out_shape=jax.ShapeDtypeStruct((rows, cols), x.dtype),
        grid=grid,
        in_specs=[
            pl.BlockSpec((block_rows, cols), lambda i: (i, 0)),  # x tile
            pl.BlockSpec((block_rows, 1), lambda i: (i, 0)),     # scale col
            pl.BlockSpec((block_rows, 1), lambda i: (i, 0)),     # bias col
        ],
        out_specs=pl.BlockSpec((block_rows, cols), lambda i: (i, 0)),
        compiler_params=pltpu.CompilerParams(
            dimension_semantics=("parallel",),     # shard row tiles across TCs (v7x)
            vmem_limit_bytes=64 * 1024 * 1024,     # headroom for double-buffered tiles
        ),
    )(x2, scale_rows, bias_rows)

    return out.reshape(x.shape)


if __name__ == "__main__":
    key = jax.random.PRNGKey(0)
    k_x, k_mean, k_std = jax.random.split(key, 3)

    N, C, H, W = 2, 4, 16, 16
    x = jax.random.normal(k_x, (N, C, H, W), dtype=jnp.float32)

    mean = jax.random.normal(k_mean, (C,), dtype=jnp.float32)
    # strictly positive std (the torch module rejects zeros)
    std = 0.5 + jax.random.uniform(k_std, (C,), dtype=jnp.float32)

    y = normalize(x, mean, std)
    y = jax.block_until_ready(y)

    # reference: (x - mean) / std with per-channel broadcast
    ref = (x - mean.reshape(1, C, 1, 1)) / std.reshape(1, C, 1, 1)
    assert y.shape == x.shape
    assert jnp.allclose(y, ref, atol=1e-5, rtol=1e-5)

    print("KERNEL_OK")
</pallas_src>

<mosaic_0001>
module attributes {stable_mosaic.version = 11 : i64} {
  func.func @_normalize_kernel(%arg0: i32, %arg1: memref<8x256xf32, #tpu.memory_space<vmem>>, %arg2: memref<8x1xf32, #tpu.memory_space<vmem>>, %arg3: memref<8x1xf32, #tpu.memory_space<vmem>>, %arg4: memref<8x256xf32, #tpu.memory_space<vmem>>) attributes {dimension_semantics = [#tpu.dimension_semantics<parallel>], iteration_bounds = array<i64: 1>, scalar_prefetch = 0 : i64, scratch_operands = 0 : i64, tpu.core_type = #tpu.core_type<tc>, window_params = [{transform_indices = @transform_0, window_bounds = array<i64: 8, 256>}, {transform_indices = @transform_1, window_bounds = array<i64: 8, 1>}, {transform_indices = @transform_2, window_bounds = array<i64: 8, 1>}, {transform_indices = @transform_3, window_bounds = array<i64: 8, 256>}]} {
    %c0 = arith.constant 0 : index
    %c0_0 = arith.constant 0 : index
    %0 = vector.load %arg1[%c0, %c0_0] : memref<8x256xf32, #tpu.memory_space<vmem>>, vector<8x256xf32>
    %c0_1 = arith.constant 0 : index
    %c0_2 = arith.constant 0 : index
    %1 = vector.load %arg2[%c0_1, %c0_2] : memref<8x1xf32, #tpu.memory_space<vmem>>, vector<8x1xf32>
    %2 = vector.broadcast %1 : vector<8x1xf32> to vector<8x256xf32>
    %3 = arith.mulf %0, %2 : vector<8x256xf32>
    %c0_3 = arith.constant 0 : index
    %c0_4 = arith.constant 0 : index
    %4 = vector.load %arg3[%c0_3, %c0_4] : memref<8x1xf32, #tpu.memory_space<vmem>>, vector<8x1xf32>
    %5 = vector.broadcast %4 : vector<8x1xf32> to vector<8x256xf32>
    %6 = arith.addf %3, %5 : vector<8x256xf32>
    %c0_5 = arith.constant 0 : index
    %c0_6 = arith.constant 0 : index
    %7 = vector.load %arg4[%c0_5, %c0_6] : memref<8x256xf32, #tpu.memory_space<vmem>>, vector<8x256xf32>
    tpu.vector_store %arg4[%c0_5, %c0_6], %6 {strides = array<i32>} : memref<8x256xf32, #tpu.memory_space<vmem>>, vector<8x256xf32>,
    return
  }
  func.func @transform_0(%arg0: i32) -> (i32, i32) {
    %c0_i32 = arith.constant 0 : i32
    %c0_i32_0 = arith.constant 0 : i32
    return %arg0, %c0_i32 : i32, i32
  }
  func.func @transform_1(%arg0: i32) -> (i32, i32) {
    %c0_i32 = arith.constant 0 : i32
    %c0_i32_0 = arith.constant 0 : i32
    return %arg0, %c0_i32 : i32, i32
  }
  func.func @transform_2(%arg0: i32) -> (i32, i32) {
    %c0_i32 = arith.constant 0 : i32
    %c0_i32_0 = arith.constant 0 : i32
    return %arg0, %c0_i32 : i32, i32
  }
  func.func @transform_3(%arg0: i32) -> (i32, i32) {
    %c0_i32 = arith.constant 0 : i32
    %c0_i32_0 = arith.constant 0 : i32
    return %arg0, %c0_i32 : i32, i32
  }
}

</mosaic_0001>

<bundles_post_ra>
// kernel: tpu_custom_call.1
= control target key start
LH: loop header
LB: loop body
LE: loop exit
PB: predicated region body
PF: predicated region fallthrough
CT: control target
= control target key end

     0   :  { %s117_s0 = inlined_call_operand.vmem [shape: f32[8,256], index: 0, kind: input, shape index: {}]   ;;  %s118_s1 = inlined_call_operand.vmem [shape: f32[8,1], index: 1, kind: input, shape index: {}]   ;;  %s119_s2 = inlined_call_operand.vmem [shape: f32[8,1], index: 2, kind: input, shape index: {}]   ;;  %s120_s3 = inlined_call_operand.hbm [shape: f32[8,256], index: 3, kind: output, shape index: {}]  }
   0x1   :  { %v17_v0 = vld [vmem:[%s118_s1] sm:$0xff] }
   0x2   :  { %8 = vsyncpa [#allocation3], 0  ;;  %v80_v1 = vmov 0   ;;  %v25_v2 = vld [vmem:[%s119_s2] sm:$0xff]  ;;  %v16_v5 = vld [vmem:[%s117_s0 + $0x8] sm:$0xff]  ;;  %s81_s1 = smov [#allocation2]  }
   0x3   :  { %53 = vset.pattern.permute.xlu0 %v80_v1  ;;  %v15_v4 = vld [vmem:[%s117_s0] sm:$0xff]  ;;  %s40_s20 = sshll.u32 %s81_s1, 4  ;;  %s42_s23 = sshll.u32 %s120_s3, 4  ;;  %s41_s20 = int_to_ptr.vmem [resolvable:$true] %s40_s20  ;;  %s43_s23 = int_to_ptr.hbm [resolvable:$true] %s42_s23 }
   0x4   :  { %20 = vperm.xlu0 %53, %v17_v0  }
   0xc   :  { %28 = vperm.xlu0 %53, %v25_v2  }
  0x76   :  { %v21_v3 = vpop.permute.xlu0 %20 }
  0x77   :  { %v23_v6 = vmul.f32 %v21_v3, %v15_v4  ;;  %v24_v7 = vmul.f32 %v21_v3, %v16_v5 }
  0x7e   :  { %v29_v8 = vpop.permute.xlu0 %28 }
  0x7f   :  { %v31_v9 = vadd.f32 %v29_v8, %v23_v6  ;;  %v32_v10 = vadd.f32 %v29_v8, %v24_v7 }
  0x81   :  { %33 = vst [vmem:[#allocation2] sm:$0xff] %v31_v9 }
  0x82   :  { %34 = vst [vmem:[#allocation2 + $0x8] sm:$0xff] %v32_v10 }
  0x83   :  { %45 = dma.vmem_to_hbm [thread:$0]  %s41_s20, 256, %s43_s23, [#allocation3]  }
  0x84   :  { %78 = dma.done.wait [#allocation3], 256  }
  0x85   :  { %79 = vsyncadd [#allocation3], 4294967040 }
  0x86   :  { %50 = vsyncpa [#allocation3], 1 }

</bundles_post_ra>
